<compile_context>
chip_gen: v7x
topology: tpu7x:2x2x1
jax: 0.10.0
libtpu: 0.0.40
codegen_flags: <defaults>
</compile_context>

<pallas_src>
import functools
import math

import jax
import jax.numpy as jnp
from jax.experimental import pallas as pl
from jax.experimental.pallas import tpu as pltpu


def _round_up(x, m):
    return ((x + m - 1) // m) * m


# -----------------------------------------------------------------------------
# Pallas kernel: tiled  out[b] = W_mat @ cols[b] + bias
# Grid = (B, O/tO, L/tN, K/tK); K-reduction is the innermost ("arbitrary") axis
# and the float32 output block is the accumulator (resident across k).
# -----------------------------------------------------------------------------
def _conv_mm_kernel(w_ref, col_ref, b_ref, o_ref, *, tk, w_resident):
    # w_ref:   (tO, K_p) if resident else (tO, tK)   weight (bf16/f32)
    # col_ref: (tK, tN)   im2col tile for batch b (bf16/f32)
    # b_ref:   (tO, 1)    bias column (f32, resident)
    # o_ref:   (tO, tN)   f32 output tile (resident across k -> accumulator)
    k = pl.program_id(3)

    @pl.when(k == 0)
    def _():
        o_ref[...] = jnp.zeros(o_ref.shape, o_ref.dtype)

    if w_resident:
        off = pl.multiple_of(k * tk, 128)
        w_tile = w_ref[:, pl.ds(off, tk)]
    else:
        w_tile = w_ref[...]

    o_ref[...] += jnp.dot(w_tile, col_ref[...],
                          preferred_element_type=jnp.float32)

    @pl.when(k == pl.num_programs(3) - 1)
    def _():
        o_ref[...] += b_ref[...]


def _choose_tiles(O, K, L):
    # tO rounded to 16 for bf16 sublane packing; capped at 512 so typical O
    # fits in one O tile (cols slab then streams HBM exactly once).
    # tK/tN are lane-dim tiles: multiples of 128, up to 1024.
    tO = min(512, _round_up(max(O, 1), 16))
    tK = min(1024, _round_up(max(K, 1), 128))
    tN = min(1024, _round_up(max(L, 1), 128))
    return tO, tK, tN


def _pallas_conv_matmul(w_mat, cols, bias, compute_dtype=jnp.bfloat16):
    """w_mat: (O, K), cols: (B, K, L), bias: (O,) -> (B, O, L) float32."""
    O, K = w_mat.shape
    B, _, L = cols.shape
    tO, tK, tN = _choose_tiles(O, K, L)
    O_p, K_p, L_p = _round_up(O, tO), _round_up(K, tK), _round_up(L, tN)

    w_p = jnp.pad(w_mat, ((0, O_p - O), (0, K_p - K))).astype(compute_dtype)
    c_p = jnp.pad(cols, ((0, 0), (0, K_p - K), (0, L_p - L))).astype(compute_dtype)
    b_p = jnp.pad(bias.reshape(O, 1).astype(jnp.float32), ((0, O_p - O), (0, 0)))

    in_it = jnp.dtype(compute_dtype).itemsize
    # Keep W VMEM-resident across the j/k axes when it fits a modest budget
    # (re-fetched only per (batch, O-tile)); otherwise tile it along K too.
    w_resident = (tO * K_p * in_it) <= (8 << 20)

    grid = (B, O_p // tO, L_p // tN, K_p // tK)

    if w_resident:
        w_spec = pl.BlockSpec((tO, K_p), lambda b, i, j, k: (i, 0))
        w_block_bytes = tO * K_p * in_it
    else:
        w_spec = pl.BlockSpec((tO, tK), lambda b, i, j, k: (i, k))
        w_block_bytes = tO * tK * in_it

    # VMEM budget: double-buffered blocks + headroom; clamp well under the
    # 64 MiB per-TC VMEM of v7x (v5e/v6e have 128 MiB, so this is conservative).
    per_step = (w_block_bytes + tK * tN * in_it + tO * tN * 4 + tO * 4)
    vmem_limit = int(2 * per_step + (4 << 20))
    vmem_limit = max(16 << 20, min(vmem_limit, 56 << 20))

    # Bytes that actually cross HBM given the reuse pattern:
    #   cols is re-read once per O tile; W once per (batch, O tile) when
    #   resident (times the N-tile count otherwise); output written once.
    w_reads = B * O_p * K_p * in_it * (1 if w_resident else (L_p // tN))
    cost = pl.CostEstimate(
        flops=2 * B * O_p * K_p * L_p,
        transcendentals=0,
        bytes_accessed=int(B * K_p * L_p * in_it * (O_p // tO)
                           + w_reads
                           + B * O_p * L_p * 4
                           + B * O_p * 4),
    )

    kernel = functools.partial(_conv_mm_kernel, tk=tK, w_resident=w_resident)

    out = pl.pallas_call(
        kernel,
        out_shape=jax.ShapeDtypeStruct((B, O_p, L_p), jnp.float32),
        grid_spec=pltpu.PrefetchScalarGridSpec(
            num_scalar_prefetch=0,
            grid=grid,
            in_specs=[
                w_spec,                                                    # weight
                pl.BlockSpec((pl.Squeezed(), tK, tN),
                             lambda b, i, j, k: (b, k, j)),                # cols
                pl.BlockSpec((tO, 1), lambda b, i, j, k: (i, 0)),          # bias
            ],
            out_specs=pl.BlockSpec((pl.Squeezed(), tO, tN),
                                   lambda b, i, j, k: (b, i, j)),
        ),
        compiler_params=pltpu.CompilerParams(
            dimension_semantics=("parallel", "parallel", "parallel", "arbitrary"),
            vmem_limit_bytes=vmem_limit,
        ),
        cost_estimate=cost,
    )(w_p, c_p, b_p)

    return out[:, :O, :L]


# -----------------------------------------------------------------------------
# im2col glue: builds (B, C*kh*kw, Ho*Wo) with torch.nn.functional.unfold's
# element ordering along K (channel-major, then kh, then kw). This is a plain
# contiguous reshape of the stacked patches -- no large transpose pass.
# -----------------------------------------------------------------------------
def _im2col(x, k_size, stride, padding):
    B, C, H, W = x.shape
    kh, kw = k_size
    xp = jnp.pad(x, ((0, 0), (0, 0), (padding, padding), (padding, padding)))
    Hp, Wp = H + 2 * padding, W + 2 * padding
    Ho = (Hp - kh) // stride + 1
    Wo = (Wp - kw) // stride + 1
    patches = []
    for i in range(kh):
        for j in range(kw):
            patches.append(
                xp[:, :, i:i + stride * Ho:stride, j:j + stride * Wo:stride])
    col = jnp.stack(patches, axis=2)                 # (B, C, kh*kw, Ho, Wo)
    col = col.reshape(B, C * kh * kw, Ho * Wo)       # (B, K, L)
    return col, Ho, Wo


@functools.partial(jax.jit, static_argnames=("k_size", "stride", "padding"))
def _conv2d_forward(x, weight, bias, *, k_size, stride, padding):
    x = x.astype(jnp.float32)
    O = weight.shape[0]
    cols, Ho, Wo = _im2col(x, k_size, stride, padding)          # (B, K, L)
    w_mat = weight.reshape(O, -1)                               # (O, K)
    out = _pallas_conv_matmul(w_mat, cols, bias)                # (B, O, L) f32
    return out.reshape(x.shape[0], O, Ho, Wo)                   # NCHW, no transpose


# -----------------------------------------------------------------------------
# Conv2d module equivalent (forward pass)
# -----------------------------------------------------------------------------
class Conv2d:
    def __init__(self, in_channels, out_channels, kernel_size=(3, 3),
                 stride=1, padding=0, key=None):
        self.in_channels = in_channels
        self.out_channels = out_channels
        self.stride = stride
        self.padding = padding
        if isinstance(kernel_size, int):
            self.k_size = (kernel_size, kernel_size)
        else:
            self.k_size = tuple(kernel_size)
        k = 1.0 / (in_channels * self.k_size[0] * self.k_size[1])
        bound = math.sqrt(k)
        key = jax.random.PRNGKey(0) if key is None else key
        kw_, kb_ = jax.random.split(key)
        self.weight = jax.random.uniform(
            kw_, (out_channels, in_channels, self.k_size[0], self.k_size[1]),
            dtype=jnp.float32, minval=-bound, maxval=bound)
        self.bias = jax.random.uniform(
            kb_, (out_channels,), dtype=jnp.float32, minval=-bound, maxval=bound)
        # NOTE: compute path is bf16 (W / cols) with f32 accumulation; pass
        # compute_dtype=jnp.float32 to _pallas_conv_matmul for exact f32 math.

    def forward(self, x):
        return _conv2d_forward(x, self.weight, self.bias,
                               k_size=self.k_size, stride=self.stride,
                               padding=self.padding)

    __call__ = forward


# -----------------------------------------------------------------------------
if __name__ == "__main__":
    key = jax.random.PRNGKey(0)
    k_x, k_p1, k_p2 = jax.random.split(key, 3)

    # Case 1: stride=1, padding=0
    B, C, H, W = 2, 4, 16, 16
    O = 8
    conv = Conv2d(C, O, kernel_size=(3, 3), stride=1, padding=0, key=k_p1)
    x = jax.random.normal(k_x, (B, C, H, W), dtype=jnp.float32)

    y = conv(x)
    y = jax.block_until_ready(y)

    ref = jax.lax.conv_general_dilated(
        x, conv.weight, window_strides=(1, 1), padding=[(0, 0)] * 2,
        dimension_numbers=("NCHW", "OIHW", "NCHW"),
    ) + conv.bias.reshape(1, O, 1, 1)

    assert y.shape == (B, O, 14, 14), y.shape
    # bf16 inputs / f32 accumulation -> widened tolerance vs. f32 reference.
    assert jnp.allclose(y, ref, atol=2e-2, rtol=2e-2)

    # Case 2: stride=2, padding=1
    conv2 = Conv2d(C, O, kernel_size=(3, 3), stride=2, padding=1, key=k_p2)
    y2 = conv2(x)
    y2 = jax.block_until_ready(y2)

    ref2 = jax.lax.conv_general_dilated(
        x, conv2.weight, window_strides=(2, 2), padding=[(1, 1)] * 2,
        dimension_numbers=("NCHW", "OIHW", "NCHW"),
    ) + conv2.bias.reshape(1, O, 1, 1)

    assert y2.shape == (B, O, 8, 8), y2.shape
    assert jnp.allclose(y2, ref2, atol=2e-2, rtol=2e-2)

    print("KERNEL_OK")
</pallas_src>

<mosaic_0001>
module attributes {stable_mosaic.version = 11 : i64} {
  func.func @_conv_mm_kernel(%arg0: i32, %arg1: i32, %arg2: i32, %arg3: i32, %arg4: memref<16x128xbf16, #tpu.memory_space<vmem>>, %arg5: memref<1x128x256xbf16, #tpu.memory_space<vmem>>, %arg6: memref<16x1xf32, #tpu.memory_space<vmem>>, %arg7: memref<1x16x256xf32, #tpu.memory_space<vmem>>) attributes {dimension_semantics = [#tpu.dimension_semantics<parallel>, #tpu.dimension_semantics<parallel>, #tpu.dimension_semantics<parallel>, #tpu.dimension_semantics<arbitrary>], iteration_bounds = array<i64: 2, 1, 1, 1>, scalar_prefetch = 0 : i64, scratch_operands = 0 : i64, tpu.core_type = #tpu.core_type<tc>, window_params = [{transform_indices = @transform_0, window_bounds = array<i64: 16, 128>}, {transform_indices = @transform_1, window_bounds = array<i64: 1, 128, 256>}, {transform_indices = @transform_2, window_bounds = array<i64: 16, 1>}, {transform_indices = @transform_3, window_bounds = array<i64: 1, 16, 256>}]} {
    %c0_i32 = arith.constant 0 : i32
    %0 = arith.cmpi eq, %arg3, %c0_i32 : i32
    %1 = arith.extui %0 : i1 to i32
    %c0_i32_0 = arith.constant 0 : i32
    %2 = arith.cmpi ne, %1, %c0_i32_0 : i32
    scf.if %2 {
      %cst_12 = arith.constant 0.000000e+00 : f32
      %19 = vector.broadcast %cst_12 : f32 to vector<16x256xf32>
      %c0_13 = arith.constant 0 : index
      %c0_14 = arith.constant 0 : index
      %c0_15 = arith.constant 0 : index
      %20 = vector.load %arg7[%c0_13, %c0_14, %c0_15] : memref<1x16x256xf32, #tpu.memory_space<vmem>>, vector<1x16x256xf32>
      %21 = vector.shape_cast %20 : vector<1x16x256xf32> to vector<16x256xf32>
      %22 = vector.shape_cast %19 : vector<16x256xf32> to vector<1x16x256xf32>
      tpu.vector_store %arg7[%c0_13, %c0_14, %c0_15], %22 {strides = array<i32>} : memref<1x16x256xf32, #tpu.memory_space<vmem>>, vector<1x16x256xf32>,
    } else {
    }
    %c128_i32 = arith.constant 128 : i32
    %3 = arith.muli %arg3, %c128_i32 : i32
    %4 = tpu.assume_multiple %3, 128 : i32
    %c0 = arith.constant 0 : index
    %5 = arith.index_cast %4 : i32 to index
    %6 = vector.load %arg4[%c0, %5] : memref<16x128xbf16, #tpu.memory_space<vmem>>, vector<16x128xbf16>
    %c0_1 = arith.constant 0 : index
    %c0_2 = arith.constant 0 : index
    %c0_3 = arith.constant 0 : index
    %7 = vector.load %arg7[%c0_1, %c0_2, %c0_3] : memref<1x16x256xf32, #tpu.memory_space<vmem>>, vector<1x16x256xf32>
    %8 = vector.shape_cast %7 : vector<1x16x256xf32> to vector<16x256xf32>
    %c0_4 = arith.constant 0 : index
    %c0_5 = arith.constant 0 : index
    %c0_6 = arith.constant 0 : index
    %9 = vector.load %arg5[%c0_4, %c0_5, %c0_6] : memref<1x128x256xbf16, #tpu.memory_space<vmem>>, vector<1x128x256xbf16>
    %10 = vector.shape_cast %9 : vector<1x128x256xbf16> to vector<128x256xbf16>
    %cst = arith.constant dense<0.000000e+00> : vector<16x256xf32>
    %11 = tpu.matmul %6, %10, %cst {dimension_numbers = #tpu.dot_dimension_numbers<[1], [0], [0], [1], [0, 0, 1, 1], [], []>} : vector<16x128xbf16>, vector<128x256xbf16>, vector<16x256xf32> -> vector<16x256xf32>
    %12 = arith.addf %8, %11 : vector<16x256xf32>
    %c0_7 = arith.constant 0 : index
    %c0_8 = arith.constant 0 : index
    %c0_9 = arith.constant 0 : index
    %13 = vector.load %arg7[%c0_7, %c0_8, %c0_9] : memref<1x16x256xf32, #tpu.memory_space<vmem>>, vector<1x16x256xf32>
    %14 = vector.shape_cast %13 : vector<1x16x256xf32> to vector<16x256xf32>
    %15 = vector.shape_cast %12 : vector<16x256xf32> to vector<1x16x256xf32>
    tpu.vector_store %arg7[%c0_7, %c0_8, %c0_9], %15 {strides = array<i32>} : memref<1x16x256xf32, #tpu.memory_space<vmem>>, vector<1x16x256xf32>,
    %c0_i32_10 = arith.constant 0 : i32
    %16 = arith.cmpi eq, %arg3, %c0_i32_10 : i32
    %17 = arith.extui %16 : i1 to i32
    %c0_i32_11 = arith.constant 0 : i32
    %18 = arith.cmpi ne, %17, %c0_i32_11 : i32
    scf.if %18 {
      %c0_12 = arith.constant 0 : index
      %c0_13 = arith.constant 0 : index
      %c0_14 = arith.constant 0 : index
      %19 = vector.load %arg7[%c0_12, %c0_13, %c0_14] : memref<1x16x256xf32, #tpu.memory_space<vmem>>, vector<1x16x256xf32>
      %20 = vector.shape_cast %19 : vector<1x16x256xf32> to vector<16x256xf32>
      %c0_15 = arith.constant 0 : index
      %c0_16 = arith.constant 0 : index
      %21 = vector.load %arg6[%c0_15, %c0_16] : memref<16x1xf32, #tpu.memory_space<vmem>>, vector<16x1xf32>
      %22 = vector.broadcast %21 : vector<16x1xf32> to vector<16x256xf32>
      %23 = arith.addf %20, %22 : vector<16x256xf32>
      %c0_17 = arith.constant 0 : index
      %c0_18 = arith.constant 0 : index
      %c0_19 = arith.constant 0 : index
      %24 = vector.load %arg7[%c0_17, %c0_18, %c0_19] : memref<1x16x256xf32, #tpu.memory_space<vmem>>, vector<1x16x256xf32>
      %25 = vector.shape_cast %24 : vector<1x16x256xf32> to vector<16x256xf32>
      %26 = vector.shape_cast %23 : vector<16x256xf32> to vector<1x16x256xf32>
      tpu.vector_store %arg7[%c0_17, %c0_18, %c0_19], %26 {strides = array<i32>} : memref<1x16x256xf32, #tpu.memory_space<vmem>>, vector<1x16x256xf32>,
    } else {
    }
    return
  }
  func.func @transform_0(%arg0: i32, %arg1: i32, %arg2: i32, %arg3: i32) -> (i32, i32) {
    %c0_i32 = arith.constant 0 : i32
    %c0_i32_0 = arith.constant 0 : i32
    return %arg1, %c0_i32 : i32, i32
  }
  func.func @transform_1(%arg0: i32, %arg1: i32, %arg2: i32, %arg3: i32) -> (i32, i32, i32) {
    %c0_i32 = arith.constant 0 : i32
    return %arg0, %arg3, %arg2 : i32, i32, i32
  }
  func.func @transform_2(%arg0: i32, %arg1: i32, %arg2: i32, %arg3: i32) -> (i32, i32) {
    %c0_i32 = arith.constant 0 : i32
    %c0_i32_0 = arith.constant 0 : i32
    return %arg1, %c0_i32 : i32, i32
  }
  func.func @transform_3(%arg0: i32, %arg1: i32, %arg2: i32, %arg3: i32) -> (i32, i32, i32) {
    %c0_i32 = arith.constant 0 : i32
    return %arg0, %arg1, %arg2 : i32, i32, i32
  }
}

</mosaic_0001>

<bundles_post_ra>
// kernel: _conv2d_forward.1
= control target key start
LH: loop header
LB: loop body
LE: loop exit
PB: predicated region body
PF: predicated region fallthrough
CT: control target
= control target key end

     0   :  { %s779_s12 = smov 0   ;;  %s781_s13 = smov 0   ;;  %s843_s0 = inlined_call_operand.vmem [shape: bf16[16,128], index: 0, kind: input, shape index: {}]   ;;  %s844_s1 = inlined_call_operand.vmem [shape: bf16[2,128,256], index: 1, kind: input, shape index: {}]   ;;  %s845_s2 = inlined_call_operand.vmem [shape: f32[16,1], index: 2, kind: input, shape index: {}]   ;;  %s846_s3 = inlined_call_operand.vmem [shape: f32[2,16,256], index: 3, kind: output, shape index: {}]  }
   0x1   :  { %s783_s14 = smov 0  }
   0x2 LB: > { %s39_s15 = sadd.s32 1, %s752_s13  ;;  %p656_p0 = scmp.ge.s32.totalorder %s756_s14, 1  ;;  %s756_s14 = sphi %s783_s14, %s13_s14   ;;  %s752_s13 = sphi %s781_s13, %s848_s13   ;;  %s748_s12 = sphi %s779_s12, %s847_s12  }
   0x3   : > { %p41_p1 = scmp.ge.s32.totalorder %s39_s15, 2  ;;  %p204_p2 = scmp.lt.s32.totalorder %s756_s14, 3 }
   0x5   : > { %s850_s15 = smov (%p41_p1, %s39_s15), 0  ;;  %p205_p3 = pnand %p656_p0, %p204_p2 }
   0x6   : > { %p264_p4 = scmp.lt.s32.totalorder (!%p205_p3), %s748_s12, 1  ;;  %v758_v0 = vmov (!%p205_p3), 0   ;;  %v480_v1 = vld [vmem:[%s845_s2] sm:$0xff] (!%p205_p3)  ;;  %v481_v2 = vld [vmem:[%s845_s2 + $0x8] sm:$0xff] (!%p205_p3) }
   0x7   : > { %208 = sbr.rel (%p205_p3) target bundleno = 268 (0x10c), region = 32  ;;  %454 = vmatprep.mubr.bf16.mxu0 (!%p205_p3), %v758_v0  ;;  %708 = vset.pattern.permute.xlu0 (!%p205_p3), %v758_v0  ;;  %v733_v19 = vld [vmem:[%s843_s0] sm:$0xff] (!%p205_p3)  }
   0x8   : > { %484 = vperm.xlu0 (!%p205_p3), %708, %v480_v1  }
   0xc   : > { %489 = vperm.xlu0 (!%p205_p3), %708, %v481_v2  }
   0xe   : > { %s852_s12 = smov (!%p264_p4, %s748_s12), 1 }
   0xf   : > { %s680_s20 = sshll.u32 %s852_s12, 7  ;;  %s681_s26 = sshll.u32 %s852_s12, 5 }
  0x10   : > { %s809_s23 = scalar_lea.vmem %s844_s1, %s680_s20  ;;  %s297_s29 = scalar_lea.vmem %s846_s3, %s681_s26 }
  0x11   : > { %v709_v3 = vld [vmem:[%s809_s23 + $0x4] ss:$8 sps:$4 sm:$0xff]   ;;  %v711_v4 = vld [vmem:[%s809_s23] ss:$8 sps:$4 sm:$0xff]   ;;  %v712_v5 = vld [vmem:[%s809_s23 + $0x14] ss:$8 sps:$4 sm:$0xff]  }
  0x12   : > { %422 = vmatprep.subr.bf16.mxu0 %v709_v3  ;;  %v714_v6 = vld [vmem:[%s809_s23 + $0x10] ss:$8 sps:$4 sm:$0xff]   ;;  %v715_v7 = vld [vmem:[%s809_s23 + $0x24] ss:$8 sps:$4 sm:$0xff]   ;;  %v717_v8 = vld [vmem:[%s809_s23 + $0x20] ss:$8 sps:$4 sm:$0xff]  }
  0x13   : > { %423 = vmatpush1.bf16.msra.mxu0 %v711_v4  ;;  %v718_v9 = vld [vmem:[%s809_s23 + $0x34] ss:$8 sps:$4 sm:$0xff]   ;;  %v720_v10 = vld [vmem:[%s809_s23 + $0x30] ss:$8 sps:$4 sm:$0xff]   ;;  %v721_v11 = vld [vmem:[%s809_s23 + $0x44] ss:$8 sps:$4 sm:$0xff]  }
  0x14   : > { %424 = vmatprep.subr.bf16.mxu0 %v712_v5  ;;  %v723_v12 = vld [vmem:[%s809_s23 + $0x40] ss:$8 sps:$4 sm:$0xff]   ;;  %v724_v13 = vld [vmem:[%s809_s23 + $0x54] ss:$8 sps:$4 sm:$0xff]   ;;  %v726_v14 = vld [vmem:[%s809_s23 + $0x50] ss:$8 sps:$4 sm:$0xff]  }
  0x15   : > { %v727_v15 = vld [vmem:[%s809_s23 + $0x64] ss:$8 sps:$4 sm:$0xff]   ;;  %v729_v16 = vld [vmem:[%s809_s23 + $0x60] ss:$8 sps:$4 sm:$0xff]   ;;  %v730_v17 = vld [vmem:[%s809_s23 + $0x74] ss:$8 sps:$4 sm:$0xff]  }
  0x16   : > { %v732_v18 = vld [vmem:[%s809_s23 + $0x70] ss:$8 sps:$4 sm:$0xff]  }
  0x17   : > { %425 = vmatpush1.bf16.msra.mxu0 %v714_v6 }
  0x18   : > { %426 = vmatprep.subr.bf16.mxu0 %v715_v7 }
  0x1b   : > { %427 = vmatpush1.bf16.msra.mxu0 %v717_v8 }
  0x1c   : > { %428 = vmatprep.subr.bf16.mxu0 %v718_v9 }
  0x1f   : > { %429 = vmatpush1.bf16.msra.mxu0 %v720_v10 }
  0x20   : > { %430 = vmatprep.subr.bf16.mxu0 %v721_v11 }
  0x23   : > { %431 = vmatpush1.bf16.msra.mxu0 %v723_v12 }
  0x24   : > { %432 = vmatprep.subr.bf16.mxu0 %v724_v13 }
  0x27   : > { %433 = vmatpush1.bf16.msra.mxu0 %v726_v14 }
  0x28   : > { %434 = vmatprep.subr.bf16.mxu0 %v727_v15 }
  0x2b   : > { %435 = vmatpush1.bf16.msra.mxu0 %v729_v16 }
  0x2c   : > { %436 = vmatprep.subr.bf16.mxu0 %v730_v17 }
  0x2f   : > { %437 = vmatpush1.bf16.msra.mxu0 %v732_v18 }
  0x32   : > { %455 = vmatmul.mubr.bf16.vlgmr.msra.gmra.mrb[0].mxu0 %v733_v19 }
  0x87   : > { %v485_v20 = vpop.permute.xlu0 %484 }
  0x8b   : > { %v490_v27 = vpop.permute.xlu0 %489 }
 0x105   : > { %v456_v21 = vpop.f32.mrb[0].mxu0 }
 0x106   : > { %v458_v22 = vpop.f32.mrb[1].mxu0  ;;  %v492_v25 = vadd.f32 %v485_v20, %v456_v21 }
 0x107   : > { %v460_v23 = vpop.f32.mrb[2].mxu0  ;;  %v493_v26 = vadd.f32 %v485_v20, %v458_v22 }
 0x108   : > { %v462_v24 = vpop.f32.mrb[3].mxu0  ;;  %496 = vst [vmem:[%s297_s29] sm:$0xff] %v492_v25  ;;  %v494_v28 = vadd.f32 %v490_v27, %v460_v23 }
 0x109   : > { %497 = vst [vmem:[%s297_s29 + $0x8] sm:$0xff] %v493_v26  ;;  %v495_v29 = vadd.f32 %v490_v27, %v462_v24 }
 0x10a   : > { %498 = vst [vmem:[%s297_s29 + $0x10] sm:$0xff] %v494_v28 }
 0x10b   : > { %499 = vst [vmem:[%s297_s29 + $0x18] sm:$0xff] %v495_v29 }
 0x10c PF: > { %s13_s14 = sadd.s32 1, %s756_s14   ;;  %s847_s12 = smov %s752_s13 }
 0x10d   : > { %p10_p5 = scmp.ge.s32.totalorder %s13_s14, 4   ;;  %s848_s13 = smov %s850_s15 }
 0x10f   :  { %12 = sbr.rel (!%p10_p5) target bundleno = 2 (0x2), region = 77 }

</bundles_post_ra>
